<compile_context>
chip_gen: v5e
topology: v5e:2x2
jax: 0.10.0
libtpu: 0.0.40
codegen_flags: <defaults>
</compile_context>

<pallas_src>
import functools

import jax
import jax.numpy as jnp
import numpy as np
from jax.experimental import pallas as pl
from jax.experimental.pallas import tpu as pltpu
from scipy.optimize import linear_sum_assignment


def _round_up(x, mult):
    return ((x + mult - 1) // mult) * mult


def _box_features(cxcywh):
    """[K, 4] cxcywh -> [K, 9] = [cx, cy, w, h, x0, y0, x1, y1, area]."""
    cx, cy, w, h = cxcywh[:, 0], cxcywh[:, 1], cxcywh[:, 2], cxcywh[:, 3]
    x0 = cx - 0.5 * w
    y0 = cy - 0.5 * h
    x1 = cx + 0.5 * w
    y1 = cy + 0.5 * h
    # Area computed from the rounded xyxy values, exactly like the reference.
    area = (x1 - x0) * (y1 - y0)
    return jnp.stack([cx, cy, w, h, x0, y0, x1, y1, area], axis=1)


def _cost_kernel(sel_logits_ref, pred_feat_ref, tgt_feat_ref, c_ref,
                 *, cost_class, cost_bbox, cost_giou, alpha, gamma):
    # sel_logits_ref: (TQ, Mp) float  logits already gathered per target class
    # pred_feat_ref:  (TQ, 9)  float  [cx, cy, w, h, x0, y0, x1, y1, area]
    # tgt_feat_ref:   (9, Mp)  float  same features, transposed (grid-invariant)
    # c_ref:          (TQ, Mp) float32
    x = sel_logits_ref[...].astype(jnp.float32)                    # (TQ, Mp)
    prob = jax.nn.sigmoid(x)
    one_m_prob = 1.0 - prob

    # Focal terms; avoid float-exponent pow (exp(g*ln x) on the EUP) for g==2.
    if gamma == 2.0:
        p_pow = prob * prob
        q_pow = one_m_prob * one_m_prob
    else:
        p_pow = prob ** gamma
        q_pow = one_m_prob ** gamma
    neg_cost = (1.0 - alpha) * p_pow * (-jnp.log(one_m_prob + 1e-8))
    pos_cost = alpha * q_pow * (-jnp.log(prob + 1e-8))
    cls_cost = pos_cost - neg_cost                                 # (TQ, Mp)

    b = pred_feat_ref[...].astype(jnp.float32)                     # (TQ, 9)
    t = tgt_feat_ref[...].astype(jnp.float32)                      # (9, Mp)

    # L1 pairwise distance (cdist p=1) over the 4 cxcywh coordinates.
    l1_cost = jnp.abs(b[:, 0:1] - t[0:1, :])
    for k in range(1, 4):
        l1_cost = l1_cost + jnp.abs(b[:, k:k + 1] - t[k:k + 1, :])  # (TQ, Mp)

    # GIoU from precomputed xyxy + areas.
    ox0, oy0 = b[:, 4:5], b[:, 5:6]
    ox1, oy1 = b[:, 6:7], b[:, 7:8]
    area1 = b[:, 8:9]
    tx0, ty0 = t[4:5, :], t[5:6, :]
    tx1, ty1 = t[6:7, :], t[7:8, :]
    area2 = t[8:9, :]

    inter_w = jnp.maximum(jnp.minimum(ox1, tx1) - jnp.maximum(ox0, tx0), 0.0)
    inter_h = jnp.maximum(jnp.minimum(oy1, ty1) - jnp.maximum(oy0, ty0), 0.0)
    inter = inter_w * inter_h
    union = area1 + area2 - inter

    enc_w = jnp.maximum(jnp.maximum(ox1, tx1) - jnp.minimum(ox0, tx0), 0.0)
    enc_h = jnp.maximum(jnp.maximum(oy1, ty1) - jnp.minimum(oy0, ty0), 0.0)
    enc = enc_w * enc_h

    # giou = inter/union - (enc - union)/enc, folded into a single divide.
    giou = (inter * enc - (enc - union) * union) / (union * enc)
    giou_cost = -giou

    c_ref[...] = (cost_bbox * l1_cost
                  + cost_class * cls_cost
                  + cost_giou * giou_cost).astype(c_ref.dtype)


def compute_cost_matrix(pred_logits, pred_boxes, tgt_ids, tgt_bbox,
                        cost_class=1.0, cost_bbox=1.0, cost_giou=1.0,
                        alpha=0.25, gamma=2.0):
    """Returns C of shape [bs, num_queries, M] (M = total number of targets)."""
    bs, nq, nc = pred_logits.shape
    n = bs * nq
    m = int(tgt_ids.shape[0])

    if m == 0:
        # No targets anywhere in the batch: empty cost matrix.
        return jnp.zeros((bs, nq, 0), dtype=jnp.float32)

    # ---- padding for lane-dense / aligned layouts -------------------------
    m_pad = _round_up(max(m, 1), 128)
    n_pad8 = _round_up(n, 8)

    # Row tile: <= 256 rows, and aim for >= 8 grid steps when there is enough
    # work (software pipelining + load balance across v7x's 2 TensorCores;
    # v5e/v6e with 1 TC only pay the ~0.35us/step overhead, amortized).
    tq = min(256, max(8, _round_up(pl.cdiv(n_pad8, 8), 8)))
    n_pad = _round_up(n_pad8, tq)
    grid = (n_pad // tq,)

    # ---- build padded inputs ---------------------------------------------
    logits_flat = pred_logits.reshape(n, nc).astype(jnp.float32)
    boxes_flat = pred_boxes.reshape(n, 4).astype(jnp.float32)
    tgt_ids_i = tgt_ids.astype(jnp.int32)
    tgt_boxes_f = tgt_bbox.astype(jnp.float32)

    # Gather class logits per target column in the wrapper (exact gather);
    # the kernel's transcendental work then scales with m_pad, not nc.
    sel_logits = jnp.take(logits_flat, tgt_ids_i, axis=1)          # (n, m)

    pad_box = jnp.array([[0.5, 0.5, 1.0, 1.0]], jnp.float32)       # unit box
    if m_pad > m:
        sel_logits = jnp.pad(sel_logits, ((0, 0), (0, m_pad - m)))
        tgt_boxes_f = jnp.concatenate(
            [tgt_boxes_f, jnp.tile(pad_box, (m_pad - m, 1))], axis=0)
    if n_pad > n:
        sel_logits = jnp.pad(sel_logits, ((0, n_pad - n), (0, 0)))
        boxes_flat = jnp.concatenate(
            [boxes_flat, jnp.tile(pad_box, (n_pad - n, 1))], axis=0)

    pred_feat = _box_features(boxes_flat)                          # (n_pad, 9)
    tgt_feat = jnp.transpose(_box_features(tgt_boxes_f))           # (9, m_pad)

    kernel = functools.partial(
        _cost_kernel, cost_class=float(cost_class), cost_bbox=float(cost_bbox),
        cost_giou=float(cost_giou), alpha=float(alpha), gamma=float(gamma))

    cost_estimate = pl.CostEstimate(
        flops=40 * n_pad * m_pad,
        transcendentals=4 * n_pad * m_pad,
        bytes_accessed=4 * (2 * n_pad * m_pad + 9 * n_pad + 9 * m_pad),
    )

    c_flat = pl.pallas_call(
        kernel,
        out_shape=jax.ShapeDtypeStruct((n_pad, m_pad), jnp.float32),
        grid=grid,
        in_specs=[
            pl.BlockSpec((tq, m_pad), lambda i: (i, 0)),
            pl.BlockSpec((tq, 9), lambda i: (i, 0)),
            pl.BlockSpec((9, m_pad), lambda i: (0, 0)),
        ],
        out_specs=pl.BlockSpec((tq, m_pad), lambda i: (i, 0)),
        compiler_params=pltpu.CompilerParams(
            dimension_semantics=("parallel",),
            vmem_limit_bytes=32 * 1024 * 1024),
        cost_estimate=cost_estimate,
    )(sel_logits, pred_feat, tgt_feat)

    return c_flat[:n, :m].reshape(bs, nq, m)


def hungarian_matcher(outputs, targets, cost_class=1.0, cost_bbox=1.0,
                      cost_giou=1.0, alpha=0.25, gamma=2.0):
    """Mirrors HungarianMatcher.forward semantics."""
    pred_logits = outputs["pred_logits"]
    pred_boxes = outputs["pred_boxes"]
    sizes = [int(v["boxes"].shape[0]) for v in targets]

    if sum(sizes) == 0:
        return [(np.zeros((0,), dtype=np.int64), np.zeros((0,), dtype=np.int64))
                for _ in sizes]

    tgt_ids = jnp.concatenate([v["labels"] for v in targets])
    tgt_bbox = jnp.concatenate([v["boxes"] for v in targets])

    C = compute_cost_matrix(pred_logits, pred_boxes, tgt_ids, tgt_bbox,
                            cost_class, cost_bbox, cost_giou, alpha, gamma)
    C = jax.block_until_ready(C)
    C_np = np.asarray(C)

    # TODO(synk): linear_sum_assignment is a sequential combinatorial algorithm
    # with no clean Pallas equivalent; it runs on host (scipy) over the
    # kernel-computed cost matrix.
    indices = []
    offset = 0
    for b, sz in enumerate(sizes):
        sub = C_np[b, :, offset:offset + sz]
        i, j = linear_sum_assignment(sub)
        indices.append((np.asarray(i, dtype=np.int64),
                        np.asarray(j, dtype=np.int64)))
        offset += sz
    return indices


def _reference_cost_matrix(pred_logits, pred_boxes, tgt_ids, tgt_bbox,
                           cost_class=1.0, cost_bbox=1.0, cost_giou=1.0,
                           alpha=0.25, gamma=2.0):
    """Pure-jnp reference for validation (matches the PyTorch module)."""
    bs, nq, nc = pred_logits.shape
    out_prob = jax.nn.sigmoid(pred_logits.reshape(bs * nq, nc))
    out_bbox = pred_boxes.reshape(bs * nq, 4)
    neg = (1 - alpha) * out_prob ** gamma * -jnp.log(1 - out_prob + 1e-8)
    pos = alpha * (1 - out_prob) ** gamma * -jnp.log(out_prob + 1e-8)
    cls = pos[:, tgt_ids] - neg[:, tgt_ids]
    l1 = jnp.sum(jnp.abs(out_bbox[:, None, :] - tgt_bbox[None, :, :]), axis=-1)

    def cxcywh_to_xyxy(x):
        cx, cy, w, h = x[..., 0], x[..., 1], x[..., 2], x[..., 3]
        return jnp.stack([cx - 0.5 * w, cy - 0.5 * h,
                          cx + 0.5 * w, cy + 0.5 * h], axis=-1)

    b1 = cxcywh_to_xyxy(out_bbox)
    b2 = cxcywh_to_xyxy(tgt_bbox)
    a1 = (b1[:, 2] - b1[:, 0]) * (b1[:, 3] - b1[:, 1])
    a2 = (b2[:, 2] - b2[:, 0]) * (b2[:, 3] - b2[:, 1])
    lt = jnp.maximum(b1[:, None, :2], b2[None, :, :2])
    rb = jnp.minimum(b1[:, None, 2:], b2[None, :, 2:])
    wh = jnp.maximum(rb - lt, 0.0)
    inter = wh[..., 0] * wh[..., 1]
    union = a1[:, None] + a2[None, :] - inter
    iou = inter / union
    lt2 = jnp.minimum(b1[:, None, :2], b2[None, :, :2])
    rb2 = jnp.maximum(b1[:, None, 2:], b2[None, :, 2:])
    wh2 = jnp.maximum(rb2 - lt2, 0.0)
    enc = wh2[..., 0] * wh2[..., 1]
    giou = iou - (enc - union) / enc
    C = cost_bbox * l1 + cost_class * cls + cost_giou * (-giou)
    return C.reshape(bs, nq, -1)


if __name__ == "__main__":
    key = jax.random.PRNGKey(0)
    bs, num_queries, num_classes = 2, 8, 32
    sizes = [3, 5]  # num_target_boxes per batch element

    k1, k2, k3, k4 = jax.random.split(key, 4)
    pred_logits = jax.random.normal(k1, (bs, num_queries, num_classes),
                                    dtype=jnp.float32)
    # cxcywh boxes with positive w/h so xyxy boxes are well formed.
    pb_cxcy = jax.random.uniform(k2, (bs, num_queries, 2), minval=0.25, maxval=0.75)
    pb_wh = jax.random.uniform(k4, (bs, num_queries, 2), minval=0.1, maxval=0.3)
    pred_boxes = jnp.concatenate([pb_cxcy, pb_wh], axis=-1).astype(jnp.float32)

    targets = []
    tk = k3
    for b, sz in enumerate(sizes):
        tk, ka, kb = jax.random.split(tk, 3)
        labels = jax.random.randint(ka, (sz,), 0, num_classes, dtype=jnp.int32)
        t_cxcy = jax.random.uniform(kb, (sz, 2), minval=0.25, maxval=0.75)
        t_wh = jax.random.uniform(kb, (sz, 2), minval=0.1, maxval=0.3)
        boxes = jnp.concatenate([t_cxcy, t_wh], axis=-1).astype(jnp.float32)
        targets.append({"labels": labels, "boxes": boxes})

    outputs = {"pred_logits": pred_logits, "pred_boxes": pred_boxes}

    # Run the Pallas kernel (cost matrix) + host Hungarian assignment.
    indices = hungarian_matcher(outputs, targets)

    # Validate the Pallas cost matrix against a pure-JAX reference.
    tgt_ids = jnp.concatenate([v["labels"] for v in targets])
    tgt_bbox = jnp.concatenate([v["boxes"] for v in targets])
    C_pallas = compute_cost_matrix(pred_logits, pred_boxes, tgt_ids, tgt_bbox)
    C_pallas = jax.block_until_ready(C_pallas)
    C_ref = _reference_cost_matrix(pred_logits, pred_boxes, tgt_ids, tgt_bbox)
    np.testing.assert_allclose(np.asarray(C_pallas), np.asarray(C_ref),
                               rtol=1e-5, atol=1e-5)

    for b, (i, j) in enumerate(indices):
        assert len(i) == len(j) == min(num_queries, sizes[b])

    print("KERNEL_OK")
</pallas_src>

<mosaic_0001>
module attributes {stable_mosaic.version = 11 : i64} {
  func.func @_cost_kernel(%arg0: i32, %arg1: memref<8x128xf32, #tpu.memory_space<vmem>>, %arg2: memref<8x9xf32, #tpu.memory_space<vmem>>, %arg3: memref<9x128xf32, #tpu.memory_space<vmem>>, %arg4: memref<8x128xf32, #tpu.memory_space<vmem>>) attributes {dimension_semantics = [#tpu.dimension_semantics<parallel>], iteration_bounds = array<i64: 2>, scalar_prefetch = 0 : i64, scratch_operands = 0 : i64, tpu.core_type = #tpu.core_type<tc>, window_params = [{transform_indices = @transform_0, window_bounds = array<i64: 8, 128>}, {transform_indices = @transform_1, window_bounds = array<i64: 8, 9>}, {pipeline_mode = #tpu.pipeline_mode<synchronous>, transform_indices = @transform_2, window_bounds = array<i64: 9, 128>}, {transform_indices = @transform_3, window_bounds = array<i64: 8, 128>}]} {
    %c0 = arith.constant 0 : index
    %c0_0 = arith.constant 0 : index
    %0 = vector.load %arg1[%c0, %c0_0] : memref<8x128xf32, #tpu.memory_space<vmem>>, vector<8x128xf32>
    %1 = arith.negf %0 : vector<8x128xf32>
    %2 = math.exp %1 : vector<8x128xf32>
    %cst = arith.constant 1.000000e+00 : f32
    %3 = vector.broadcast %cst : f32 to vector<8x128xf32>
    %4 = arith.addf %3, %2 : vector<8x128xf32>
    %5 = arith.divf %3, %4 : vector<8x128xf32>
    %cst_1 = arith.constant 1.000000e+00 : f32
    %6 = vector.broadcast %cst_1 : f32 to vector<8x128xf32>
    %7 = arith.subf %6, %5 : vector<8x128xf32>
    %8 = arith.mulf %5, %5 : vector<8x128xf32>
    %9 = arith.mulf %7, %7 : vector<8x128xf32>
    %cst_2 = arith.constant 7.500000e-01 : f32
    %10 = vector.broadcast %cst_2 : f32 to vector<8x128xf32>
    %11 = arith.mulf %10, %8 : vector<8x128xf32>
    %cst_3 = arith.constant 9.99999993E-9 : f32
    %12 = vector.broadcast %cst_3 : f32 to vector<8x128xf32>
    %13 = arith.addf %7, %12 : vector<8x128xf32>
    %14 = math.log %13 : vector<8x128xf32>
    %cst_4 = arith.constant 0.000000e+00 : f32
    %15 = vector.broadcast %cst_4 : f32 to vector<8x128xf32>
    %16 = arith.subf %15, %14 : vector<8x128xf32>
    %17 = arith.mulf %11, %16 : vector<8x128xf32>
    %cst_5 = arith.constant 2.500000e-01 : f32
    %18 = vector.broadcast %cst_5 : f32 to vector<8x128xf32>
    %19 = arith.mulf %18, %9 : vector<8x128xf32>
    %cst_6 = arith.constant 9.99999993E-9 : f32
    %20 = vector.broadcast %cst_6 : f32 to vector<8x128xf32>
    %21 = arith.addf %5, %20 : vector<8x128xf32>
    %22 = math.log %21 : vector<8x128xf32>
    %cst_7 = arith.constant 0.000000e+00 : f32
    %23 = vector.broadcast %cst_7 : f32 to vector<8x128xf32>
    %24 = arith.subf %23, %22 : vector<8x128xf32>
    %25 = arith.mulf %19, %24 : vector<8x128xf32>
    %26 = arith.subf %25, %17 : vector<8x128xf32>
    %c0_8 = arith.constant 0 : index
    %c0_9 = arith.constant 0 : index
    %27 = vector.load %arg2[%c0_8, %c0_9] : memref<8x9xf32, #tpu.memory_space<vmem>>, vector<8x9xf32>
    %c0_10 = arith.constant 0 : index
    %c0_11 = arith.constant 0 : index
    %28 = vector.load %arg3[%c0_10, %c0_11] : memref<9x128xf32, #tpu.memory_space<vmem>>, vector<9x128xf32>
    %29 = vector.extract_strided_slice %27 {offsets = [0, 0], sizes = [8, 1], strides = [1, 1]} : vector<8x9xf32> to vector<8x1xf32>
    %30 = vector.extract_strided_slice %28 {offsets = [0, 0], sizes = [1, 128], strides = [1, 1]} : vector<9x128xf32> to vector<1x128xf32>
    %31 = vector.broadcast %29 : vector<8x1xf32> to vector<8x128xf32>
    %32 = vector.broadcast %30 : vector<1x128xf32> to vector<8x128xf32>
    %33 = arith.subf %31, %32 : vector<8x128xf32>
    %34 = math.absf %33 : vector<8x128xf32>
    %35 = vector.extract_strided_slice %27 {offsets = [0, 1], sizes = [8, 1], strides = [1, 1]} : vector<8x9xf32> to vector<8x1xf32>
    %36 = vector.extract_strided_slice %28 {offsets = [1, 0], sizes = [1, 128], strides = [1, 1]} : vector<9x128xf32> to vector<1x128xf32>
    %37 = vector.broadcast %35 : vector<8x1xf32> to vector<8x128xf32>
    %38 = vector.broadcast %36 : vector<1x128xf32> to vector<8x128xf32>
    %39 = arith.subf %37, %38 : vector<8x128xf32>
    %40 = math.absf %39 : vector<8x128xf32>
    %41 = arith.addf %34, %40 : vector<8x128xf32>
    %42 = vector.extract_strided_slice %27 {offsets = [0, 2], sizes = [8, 1], strides = [1, 1]} : vector<8x9xf32> to vector<8x1xf32>
    %43 = vector.extract_strided_slice %28 {offsets = [2, 0], sizes = [1, 128], strides = [1, 1]} : vector<9x128xf32> to vector<1x128xf32>
    %44 = vector.broadcast %42 : vector<8x1xf32> to vector<8x128xf32>
    %45 = vector.broadcast %43 : vector<1x128xf32> to vector<8x128xf32>
    %46 = arith.subf %44, %45 : vector<8x128xf32>
    %47 = math.absf %46 : vector<8x128xf32>
    %48 = arith.addf %41, %47 : vector<8x128xf32>
    %49 = vector.extract_strided_slice %27 {offsets = [0, 3], sizes = [8, 1], strides = [1, 1]} : vector<8x9xf32> to vector<8x1xf32>
    %50 = vector.extract_strided_slice %28 {offsets = [3, 0], sizes = [1, 128], strides = [1, 1]} : vector<9x128xf32> to vector<1x128xf32>
    %51 = vector.broadcast %49 : vector<8x1xf32> to vector<8x128xf32>
    %52 = vector.broadcast %50 : vector<1x128xf32> to vector<8x128xf32>
    %53 = arith.subf %51, %52 : vector<8x128xf32>
    %54 = math.absf %53 : vector<8x128xf32>
    %55 = arith.addf %48, %54 : vector<8x128xf32>
    %56 = vector.extract_strided_slice %27 {offsets = [0, 4], sizes = [8, 1], strides = [1, 1]} : vector<8x9xf32> to vector<8x1xf32>
    %57 = vector.extract_strided_slice %27 {offsets = [0, 5], sizes = [8, 1], strides = [1, 1]} : vector<8x9xf32> to vector<8x1xf32>
    %58 = vector.extract_strided_slice %27 {offsets = [0, 6], sizes = [8, 1], strides = [1, 1]} : vector<8x9xf32> to vector<8x1xf32>
    %59 = vector.extract_strided_slice %27 {offsets = [0, 7], sizes = [8, 1], strides = [1, 1]} : vector<8x9xf32> to vector<8x1xf32>
    %60 = vector.extract_strided_slice %27 {offsets = [0, 8], sizes = [8, 1], strides = [1, 1]} : vector<8x9xf32> to vector<8x1xf32>
    %61 = vector.extract_strided_slice %28 {offsets = [4, 0], sizes = [1, 128], strides = [1, 1]} : vector<9x128xf32> to vector<1x128xf32>
    %62 = vector.extract_strided_slice %28 {offsets = [5, 0], sizes = [1, 128], strides = [1, 1]} : vector<9x128xf32> to vector<1x128xf32>
    %63 = vector.extract_strided_slice %28 {offsets = [6, 0], sizes = [1, 128], strides = [1, 1]} : vector<9x128xf32> to vector<1x128xf32>
    %64 = vector.extract_strided_slice %28 {offsets = [7, 0], sizes = [1, 128], strides = [1, 1]} : vector<9x128xf32> to vector<1x128xf32>
    %65 = vector.extract_strided_slice %28 {offsets = [8, 0], sizes = [1, 128], strides = [1, 1]} : vector<9x128xf32> to vector<1x128xf32>
    %66 = vector.broadcast %58 : vector<8x1xf32> to vector<8x128xf32>
    %67 = vector.broadcast %63 : vector<1x128xf32> to vector<8x128xf32>
    %68 = arith.minimumf %66, %67 : vector<8x128xf32>
    %69 = vector.broadcast %56 : vector<8x1xf32> to vector<8x128xf32>
    %70 = vector.broadcast %61 : vector<1x128xf32> to vector<8x128xf32>
    %71 = arith.maximumf %69, %70 : vector<8x128xf32>
    %72 = arith.subf %68, %71 : vector<8x128xf32>
    %cst_12 = arith.constant 0.000000e+00 : f32
    %73 = vector.broadcast %cst_12 : f32 to vector<8x128xf32>
    %74 = arith.maximumf %72, %73 : vector<8x128xf32>
    %75 = vector.broadcast %59 : vector<8x1xf32> to vector<8x128xf32>
    %76 = vector.broadcast %64 : vector<1x128xf32> to vector<8x128xf32>
    %77 = arith.minimumf %75, %76 : vector<8x128xf32>
    %78 = vector.broadcast %57 : vector<8x1xf32> to vector<8x128xf32>
    %79 = vector.broadcast %62 : vector<1x128xf32> to vector<8x128xf32>
    %80 = arith.maximumf %78, %79 : vector<8x128xf32>
    %81 = arith.subf %77, %80 : vector<8x128xf32>
    %cst_13 = arith.constant 0.000000e+00 : f32
    %82 = vector.broadcast %cst_13 : f32 to vector<8x128xf32>
    %83 = arith.maximumf %81, %82 : vector<8x128xf32>
    %84 = arith.mulf %74, %83 : vector<8x128xf32>
    %85 = vector.broadcast %60 : vector<8x1xf32> to vector<8x128xf32>
    %86 = vector.broadcast %65 : vector<1x128xf32> to vector<8x128xf32>
    %87 = arith.addf %85, %86 : vector<8x128xf32>
    %88 = arith.subf %87, %84 : vector<8x128xf32>
    %89 = vector.broadcast %58 : vector<8x1xf32> to vector<8x128xf32>
    %90 = vector.broadcast %63 : vector<1x128xf32> to vector<8x128xf32>
    %91 = arith.maximumf %89, %90 : vector<8x128xf32>
    %92 = vector.broadcast %56 : vector<8x1xf32> to vector<8x128xf32>
    %93 = vector.broadcast %61 : vector<1x128xf32> to vector<8x128xf32>
    %94 = arith.minimumf %92, %93 : vector<8x128xf32>
    %95 = arith.subf %91, %94 : vector<8x128xf32>
    %cst_14 = arith.constant 0.000000e+00 : f32
    %96 = vector.broadcast %cst_14 : f32 to vector<8x128xf32>
    %97 = arith.maximumf %95, %96 : vector<8x128xf32>
    %98 = vector.broadcast %59 : vector<8x1xf32> to vector<8x128xf32>
    %99 = vector.broadcast %64 : vector<1x128xf32> to vector<8x128xf32>
    %100 = arith.maximumf %98, %99 : vector<8x128xf32>
    %101 = vector.broadcast %57 : vector<8x1xf32> to vector<8x128xf32>
    %102 = vector.broadcast %62 : vector<1x128xf32> to vector<8x128xf32>
    %103 = arith.minimumf %101, %102 : vector<8x128xf32>
    %104 = arith.subf %100, %103 : vector<8x128xf32>
    %cst_15 = arith.constant 0.000000e+00 : f32
    %105 = vector.broadcast %cst_15 : f32 to vector<8x128xf32>
    %106 = arith.maximumf %104, %105 : vector<8x128xf32>
    %107 = arith.mulf %97, %106 : vector<8x128xf32>
    %108 = arith.mulf %84, %107 : vector<8x128xf32>
    %109 = arith.subf %107, %88 : vector<8x128xf32>
    %110 = arith.mulf %109, %88 : vector<8x128xf32>
    %111 = arith.subf %108, %110 : vector<8x128xf32>
    %112 = arith.mulf %88, %107 : vector<8x128xf32>
    %113 = arith.divf %111, %112 : vector<8x128xf32>
    %cst_16 = arith.constant 0.000000e+00 : f32
    %114 = vector.broadcast %cst_16 : f32 to vector<8x128xf32>
    %115 = arith.subf %114, %113 : vector<8x128xf32>
    %cst_17 = arith.constant 1.000000e+00 : f32
    %116 = vector.broadcast %cst_17 : f32 to vector<8x128xf32>
    %117 = arith.mulf %116, %55 : vector<8x128xf32>
    %cst_18 = arith.constant 1.000000e+00 : f32
    %118 = vector.broadcast %cst_18 : f32 to vector<8x128xf32>
    %119 = arith.mulf %118, %26 : vector<8x128xf32>
    %120 = arith.addf %117, %119 : vector<8x128xf32>
    %cst_19 = arith.constant 1.000000e+00 : f32
    %121 = vector.broadcast %cst_19 : f32 to vector<8x128xf32>
    %122 = arith.mulf %121, %115 : vector<8x128xf32>
    %123 = arith.addf %120, %122 : vector<8x128xf32>
    %c0_20 = arith.constant 0 : index
    %c0_21 = arith.constant 0 : index
    %124 = vector.load %arg4[%c0_20, %c0_21] : memref<8x128xf32, #tpu.memory_space<vmem>>, vector<8x128xf32>
    tpu.vector_store %arg4[%c0_20, %c0_21], %123 {strides = array<i32>} : memref<8x128xf32, #tpu.memory_space<vmem>>, vector<8x128xf32>,
    return
  }
  func.func @transform_0(%arg0: i32) -> (i32, i32) {
    %c0_i32 = arith.constant 0 : i32
    %c0_i32_0 = arith.constant 0 : i32
    return %arg0, %c0_i32 : i32, i32
  }
  func.func @transform_1(%arg0: i32) -> (i32, i32) {
    %c0_i32 = arith.constant 0 : i32
    %c0_i32_0 = arith.constant 0 : i32
    return %arg0, %c0_i32 : i32, i32
  }
  func.func @transform_2(%arg0: i32) -> (i32, i32) {
    %c0_i32 = arith.constant 0 : i32
    %c0_i32_0 = arith.constant 0 : i32
    %c0_i32_1 = arith.constant 0 : i32
    return %c0_i32, %c0_i32_0 : i32, i32
  }
  func.func @transform_3(%arg0: i32) -> (i32, i32) {
    %c0_i32 = arith.constant 0 : i32
    %c0_i32_0 = arith.constant 0 : i32
    return %arg0, %c0_i32 : i32, i32
  }
}

</mosaic_0001>

<bundles_post_ra>
// kernel: tpu_custom_call.1
= control target key start
LH: loop header
LB: loop body
LE: loop exit
PB: predicated region body
PF: predicated region fallthrough
CT: control target
= control target key end

     0   :  { %s983_s0 = inlined_call_operand.hbm [shape: f32[16,128], index: 0, kind: input, shape index: {}]   ;;  %s984_s1 = inlined_call_operand.hbm [shape: f32[16,9], index: 1, kind: input, shape index: {}]   ;;  %s985_s2 = inlined_call_operand.hbm [shape: f32[9,128], index: 2, kind: input, shape index: {}]   ;;  %s986_s3 = inlined_call_operand.hbm [shape: f32[16,128], index: 3, kind: output, shape index: {}]  }
   0x1   :  { %987 = sst [smem:[#allocation14_spill]] %s985_s2 }
   0x2   :  { %8 = vsyncpa [#allocation3], 0 }
   0x3   :  { %10 = vsyncpa [#allocation3 + $0x1], 0 }
   0x4   :  { %11 = vsyncpa [#allocation6], 0 }
   0x5   :  { %13 = vsyncpa [#allocation6 + $0x1], 0 }
   0x6   :  { %14 = vsyncpa [#allocation4], 0 }
   0x7   :  { %16 = vsyncpa [#allocation4 + $0x1], 0  ;;  %s811_s12 = smov 0   ;;  %s813_s13 = smov 0  }
   0x8   :  { %s815_s14 = smov 0   ;;  %s817_s15 = smov 0  }
   0x9 LB: > { %s988_s2 = sld [smem:[#allocation14_spill]]  ;;  %s835_s19 = sadd.s32 4294967295, %s777_s15   ;;  %s777_s15 = sphi %s817_s15, %s1001_s15   ;;  %s773_s14 = sphi %s815_s14, %s1000_s14   ;;  %s769_s13 = sphi %s813_s13, %s999_s13   ;;  %s765_s12 = sphi %s811_s12, %s998_s12  }
   0xa   : > { %p502_p0 = scmp.ge.s32.totalorder %s777_s15, 1  ;;  %p43_p1 = scmp.eq.s32.totalorder %s835_s19, 0 }
   0xb   : > { %p126_p2 = scmp.lt.s32.totalorder %s777_s15, 3  ;;  %s779_s21 = smov [#allocation7]  }
   0xc   : > { %s139_s22 = sshll.u32 %s779_s21, 4  ;;  %s780_s23 = smov 128   ;;  %s140_s22 = int_to_ptr.vmem [resolvable:$true] %s139_s22 }
   0xd   : > { %p840_p3 = pnand %p502_p0, %p126_p2  ;;  %s781_s24 = smov 8  }
   0xe   : > { %s501_s25 = sadd.s32 4294967294, %s777_s15   ;;  %s851_s26 = sadd.s32 1, %s777_s15  }
   0xf   : > { %s137_s18 = sshll.u32 %s988_s2, 4  ;;  %p529_p4 = pneg %p840_p3  ;;  %s138_s18 = int_to_ptr.hbm [resolvable:$true] %s137_s18 }
  0x10   : > { %s29_s27 = sadd.s32 1, %s773_s14  ;;  %s26_s28 = ssub.s32 %s777_s15, %s851_s26 }
  0x11   : > { %p530_p6 = pnand %p529_p4, %p43_p1  ;;  %p36_p7 = scmp.ne.s32.totalorder %s773_s14, %s769_s13 }
  0x12   : > { %p27_p8 = scmp.eq.s32.totalorder %s26_s28, 0  ;;  %p37_p9 = scmp.eq.s32.totalorder %s777_s15, 0 }
  0x13   : > { %532 = dma.hbm_to_vmem [thread:$0]  (!%p530_p6), %s138_s18, 256, %s140_s22, [#allocation6], %s780_s23, %s780_s23, %s781_s24  }
  0x14   : > { %p42_p10 = scmp.ne.s32.totalorder %s769_s13, %s765_s12  ;;  %p113_p11 = scmp.eq.s32.totalorder %s835_s19, 1 }
  0x15   : > { %s863_s29 = scalar_select %p27_p8, %s773_s14, %s29_s27  }
  0x16   : > { %p865_p12 = por %p37_p9, %p36_p7  ;;  %p871_p13 = por %p43_p1, %p42_p10 }
  0x17   : > { %990 = sst [smem:[#allocation13_spill]] %s863_s29  ;;  %p875_p0 = por %p113_p11, %p36_p7 }
  0x18   : > { %p119_p2 = scmp.eq.s32.totalorder %s501_s25, 1  ;;  %p545_p4 = scmp.lt.s32.totalorder %s777_s15, 2 }
  0x19   : > { %s153_s6 = sand.u32 1, %s773_s14   ;;  %s506_s9 = sshll.u32 %s777_s15, 3 }
  0x1a   : > { %p881_p6 = por %p119_p2, %p42_p10  ;;  %s505_s8 = sshll.u32 %s153_s6, 3 }
  0x1b   : > { %s161_s16 = scalar_lea.hbm %s983_s0, %s506_s9  ;;  %s157_s18 = scalar_lea.vmem [#allocation2], %s505_s8 }
  0x1c   : > { %s163_s17 = sshll.u32 %s161_s16, 4  ;;  %s165_s21 = sshll.u32 %s157_s18, 4  ;;  %s164_s17 = int_to_ptr.hbm [resolvable:$true] %s163_s17  ;;  %s166_s21 = int_to_ptr.vmem [resolvable:$true] %s165_s21 }
  0x1d   : > { %p891_p7 = pnand %p545_p4, %p865_p12  ;;  %s180_s25 = scalar_lea.hbm %s984_s1, %s506_s9 }
  0x1e   : > { %s172_s27 = sand.u32 1, %s777_s15   ;;  %s154_s28 = scalar_lea.sflag [#allocation3], %s153_s6 }
  0x1f   : > { %s643_s10 = sshra.s32 %s164_s17, 4  ;;  %p647_p9 = pneg %p891_p7  ;;  %s644_s10 = int_to_ptr.hbm [resolvable:$true] %s643_s10 }
  0x20   : > { %s645_s11 = scalar_lea.hbm %s644_s10, 8  ;;  %s650_s18 = scalar_lea.hbm %s983_s0, 16 }
  0x21   : > { %p646_p8 = scmp.ne.s32.totalorder %s644_s10, %s645_s11  ;;  %p651_p12 = scmp.lt.s32.totalorder %s644_s10, %s983_s0 }
  0x22   : > { %p652_p2 = scmp.lt.s32.totalorder %s650_s18, %s645_s11 }
  0x23   : > { %p648_p10 = pnand %p647_p9, %p646_p8 }
  0x24   : > { %p653_p4 = por %p652_p2, %p651_p12 }
  0x25   : > { %p649_p11 = pneg %p648_p10 }
  0x27   : > { %p654_p5 = pnand %p653_p4, %p649_p11 }
  0x29   : > { %657 = shalt.err (!%p654_p5)
}
  0x2a   : > { %536 = dma.hbm_to_vmem [thread:$0]  (!%p891_p7), %s164_s17, 128, %s166_s21, %s154_s28  }
  0x2b   : > { %s182_s6 = sshll.u32 %s180_s25, 4  ;;  %s176_s9 = scalar_lea.vmem [#allocation5], %s505_s8  ;;  %s183_s6 = int_to_ptr.hbm [resolvable:$true] %s182_s6 }
  0x2c   : > { %s184_s2 = sshll.u32 %s176_s9, 4  ;;  %s173_s29 = scalar_lea.sflag [#allocation6], %s172_s27  ;;  %s185_s2 = int_to_ptr.vmem [resolvable:$true] %s184_s2 }
  0x2d   : > { %s673_s30 = sshra.s32 %s183_s6, 4  ;;  %s680_s18 = scalar_lea.hbm %s984_s1, 16  ;;  %s674_s30 = int_to_ptr.hbm [resolvable:$true] %s673_s30 }
  0x2e   : > { %s675_s16 = scalar_lea.hbm %s674_s30, 8  ;;  %p681_p5 = scmp.lt.s32.totalorder %s674_s30, %s984_s1 }
  0x2f   : > { %p676_p8 = scmp.ne.s32.totalorder %s674_s30, %s675_s16  ;;  %p682_p11 = scmp.lt.s32.totalorder %s680_s18, %s675_s16 }
  0x31   : > { %p678_p10 = pnand %p676_p8, %p647_p9  ;;  %p683_p2 = por %p682_p11, %p681_p5 }
  0x33   : > { %p679_p12 = pneg %p678_p10 }
  0x35   : > { %p684_p4 = pnand %p683_p2, %p679_p12 }
  0x37   : > { %687 = shalt.err (!%p684_p4)
}
  0x38   : > { %539 = dma.hbm_to_vmem [thread:$0]  (!%p891_p7), %s183_s6, 128, %s185_s2, %s173_s29  }
  0x39   : > { %193 = sbr.rel (%p840_p3) target bundleno = 233 (0xe9), region = 32  ;;  %s926_s8 = sand.u32 (!%p840_p3), 1, %s769_s13  }
  0x3a   : > { %s929_s21 = sshll.u32 (!%p840_p3), %s926_s8, 3  ;;  %s196_s25 = scalar_lea.sflag (!%p840_p3), [#allocation3], %s926_s8 }
  0x3b   : > { %s199_s27 = scalar_lea.vmem (!%p840_p3), [#allocation2], %s929_s21 }
  0x3e   : > { %748 = dma.done.wait (%p871_p13), %s196_s25, 128  }
  0x3f   : > { %750 = vsyncadd (%p871_p13), %s196_s25, 4294967168  ;;  %s205_s2 = sand.u32 1, %s835_s19   ;;  %s209_s29 = scalar_lea.vmem [#allocation5], %s929_s21 }
  0x40   : > { %s206_s20 = scalar_lea.sflag [#allocation6], %s205_s2 }
  0x41   : > { %752 = dma.done.wait (%p871_p13), %s206_s20, 128  }
  0x42   : > { %754 = vsyncadd (%p871_p13), %s206_s20, 4294967168 }
  0x43   : > { %756 = dma.done.wait (%p43_p1), [#allocation6], 256  }
  0x44   : > { %758 = vsyncadd (%p43_p1), [#allocation6], 4294967040  ;;  %v782_v0 = vmov 7   ;;  %v783_v1 = vmov 6   ;;  %v784_v2 = vmov 8   ;;  %v279_v3 = vld [vmem:[%s209_s29] sm:$0xff] }
  0x45   : > { %594 = vset.pattern.permute.xlu1 %v782_v0  ;;  %592 = vset.pattern.permute.xlu0 %v783_v1  ;;  %v785_v4 = vmov 5   ;;  %v786_v5 = vmov 4   ;;  %v787_v6 = vmov 0   ;;  %v788_v7 = vmov 1   ;;  %v243_v10 = vld [vmem:[%s199_s27] sm:$0xff]  ;;  %s516_s4 = sshll.u32 %s835_s19, 3 }
  0x46   : > { %596 = vset.pattern.permute.xlu2 %v784_v2  ;;  %329 = vperm.xlu1 %594, %v279_v3   ;;  %v789_v8 = vmov 3   ;;  %v790_v9 = vmov 2   ;;  %v514_v11 = vmul.f32 -1.442695, %v243_v10  ;;  %v280_v26 = vld [vmem:[#allocation7] sm:$0xff]  ;;  %s394_s24 = scalar_lea.hbm %s986_s3, %s516_s4  ;;  %s242_s6 = scalar_lea.vmem [#allocation8], %s929_s21 }
  0x47   : > { %315 = vperm.xlu0 %592, %v279_v3   ;;  %344 = vperm.xlu2 %596, %v279_v3   ;;  %v332_v29 = vperm.slane %v280_v26, 7  ;;  %v318_v30 = vperm.slane %v280_v26, 6  ;;  %v338_v31 = vperm.slane %v280_v26, 5  ;;  %v324_v32 = vperm.slane %v280_v26, 4  ;;  %v602_v38 = vld [vmem:[#allocation7 + $0x8] ss:$0 sm:$0xff] }
  0x48   : > { %603 = vpow2.f32 %v514_v11  ;;  %v287_v57 = vperm.slane %v280_v26, 0  ;;  %v294_v58 = vperm.slane %v280_v26, 1  ;;  %s396_s19 = sshll.u32 %s242_s6, 4  ;;  %s398_s9 = sshll.u32 %s394_s24, 4  ;;  %s397_s19 = int_to_ptr.vmem [resolvable:$true] %s396_s19  ;;  %s399_s9 = int_to_ptr.hbm [resolvable:$true] %s398_s9 }
  0x49   : > { %s384_s30 = scalar_lea.sflag [#allocation4], %s926_s8  ;;  %s717_s16 = sshra.s32 %s399_s9, 4  ;;  %s718_s16 = int_to_ptr.hbm [resolvable:$true] %s717_s16 }
  0x4a   : > { %s719_s10 = scalar_lea.hbm %s718_s16, 8  ;;  %s723_s23 = scalar_lea.hbm %s986_s3, 16 }
  0x4b   : > { %p720_p1 = scmp.ne.s32.totalorder %s718_s16, %s719_s10  ;;  %p724_p7 = scmp.lt.s32.totalorder %s718_s16, %s986_s3 }
  0x4c   : > { %p725_p9 = scmp.lt.s32.totalorder %s723_s23, %s719_s10 }
  0x4d   : > { %p721_p3 = pnand %p720_p1, %p875_p0 }
  0x4e   : > { %595 = vset.pattern.permute.xlu1 %v785_v4  ;;  %v604_v12 = vpop.eup %603  ;;  %p726_p8 = por %p725_p9, %p724_p7 }
  0x4f   : > { %593 = vset.pattern.permute.xlu0 %v786_v5  ;;  %335 = vperm.xlu1 %595, %v279_v3   ;;  %v247_v13 = vadd.f32 1.0, %v604_v12  ;;  %p722_p13 = pneg %p721_p3 }
  0x50   : > { %321 = vperm.xlu0 %593, %v279_v3   ;;  %597 = vset.pattern.permute.xlu2 %v787_v6 }
  0x51   : > { %284 = vperm.xlu2 %597, %v279_v3   ;;  %605 = vrcp.f32 %v247_v13  ;;  %vm253_vm0 = vweird.f32 %v247_v13  ;;  %v259_v18 = vand.u32 2147483648, %v247_v13  ;;  %v257_v20 = vand.u32 2147483647, %v247_v13  ;;  %p727_p10 = pnand %p726_p8, %p722_p13 }
  0x53   : > { %v260_v21 = vor.u32 1.1754944e-38, %v259_v18  ;;  %vm258_vm3 = vcmp.eq.f32.partialorder %v257_v20, 8.507059e+37 }
  0x57   : > { %598 = vset.pattern.permute.xlu1 %v788_v7  ;;  %v606_v14 = vpop.eup %605  ;;  %v310_v7 = vperm.slane %v280_v26, 3 }
  0x58   : > { %600 = vset.pattern.permute.xlu0 %v789_v8  ;;  %291 = vperm.xlu1 %598, %v279_v3   ;;  %v249_v15 = vmul.f32 %v606_v14, %v247_v13  ;;  %vm254_vm1 = vweird.f32 %v606_v14 }
  0x59   : > { %307 = vperm.xlu0 %600, %v279_v3   ;;  %599 = vset.pattern.permute.xlu2 %v790_v9  ;;  %vm255_vm2 = vmor %vm253_vm0, %vm254_vm1 }
  0x5a   : > { %299 = vperm.xlu2 %599, %v279_v3   ;;  %v250_v16 = vsub.f32 1.0, %v249_v15  ;;  %v302_v3 = vperm.slane %v280_v26, 2 }
  0x5c   : > { %v251_v17 = vmul.f32 %v606_v14, %v250_v16 }
  0x5e   : > { %v252_v19 = vadd.f32 %v606_v14, %v251_v17 }
  0x60   : > { %v256_v22 = vsel %vm255_vm2, %v606_v14, %v252_v19 }
  0x61   : > { %601 = vset.pattern.permute.xlu0 %v784_v2  ;;  %v261_v25 = vsel %vm258_vm3, %v260_v21, %v256_v22 }
  0x62   : > { %v263_v28 = vsub.f32 1.0, %v261_v25  ;;  %v273_v45 = vadd.f32 1e-08, %v261_v25  ;;  %v264_v5 = vmul.f32 %v261_v25, %v261_v25 }
  0x64   : > { %v267_v33 = vadd.f32 1e-08, %v263_v28  ;;  %v265_v8 = vmul.f32 %v263_v28, %v263_v28  ;;  %v266_v14 = vmul.f32 0.75, %v264_v5 }
  0x66   : > { %607 = vlog2.f32 %v267_v33  ;;  %v272_v18 = vmul.f32 0.25, %v265_v8 }
  0x67   : > { %609 = vlog2.f32 %v273_v45 }
  0x6c   : > { %v608_v62 = vpop.eup %607 }
  0x6d   : > { %v610_v0 = vpop.eup %609  ;;  %v269_v6 = vmul.f32 0.6931472, %v608_v62 }
  0x6e   : > { %v275_v9 = vmul.f32 0.6931472, %v610_v0 }
  0x6f   : > { %v270_v15 = vsub.f32 0.0, %v269_v6 }
  0x70   : > { %v276_v19 = vsub.f32 0.0, %v275_v9 }
  0x71   : > { %v271_v25 = vmul.f32 %v270_v15, %v266_v14 }
  0x72   : > { %v277_v28 = vmul.f32 %v276_v19, %v272_v18 }
  0xa1   : > { %v345_v27 = vpop.permute.xlu2 %344 }
  0xa2   : > { %v348_v51 = vadd.f32 %v602_v38, %v345_v27 }
  0xab   : > { %v285_v50 = vpop.permute.xlu2 %284 }
  0xac   : > { %v288_v1 = vsub.f32 %v285_v50, %v287_v57 }
  0xae   : > { %v289_v10 = vand.u32 2147483647, %v288_v1 }
  0xb4   : > { %v300_v4 = vpop.permute.xlu2 %299 }
  0xb5   : > { %v303_v12 = vsub.f32 %v300_v4, %v302_v3 }
  0xb7   : > { %v304_v22 = vand.u32 2147483647, %v303_v12 }
  0xb8   : > { %v330_v23 = vpop.permute.xlu1 %329 }
  0xb9   : > { %v316_v24 = vpop.permute.xlu0 %315  ;;  %v333_v34 = vmin.f32 %v330_v23, %v332_v29  ;;  %v354_v35 = vmax.f32 %v330_v23, %v332_v29 }
  0xba   : > { %v319_v36 = vmin.f32 %v316_v24, %v318_v30  ;;  %v350_v37 = vmax.f32 %v316_v24, %v318_v30 }
  0xc1   : > { %v336_v39 = vpop.permute.xlu1 %335 }
  0xc2   : > { %v322_v40 = vpop.permute.xlu0 %321  ;;  %v339_v41 = vmax.f32 %v336_v39, %v338_v31  ;;  %v355_v42 = vmin.f32 %v336_v39, %v338_v31 }
  0xc3   : > { %v325_v43 = vmax.f32 %v322_v40, %v324_v32  ;;  %v351_v44 = vmin.f32 %v322_v40, %v324_v32 }
  0xc4   : > { %v340_v46 = vsub.f32 %v333_v34, %v339_v41  ;;  %v356_v47 = vsub.f32 %v354_v35, %v355_v42 }
  0xc5   : > { %v326_v48 = vsub.f32 %v319_v36, %v325_v43  ;;  %v352_v49 = vsub.f32 %v350_v37, %v351_v44  ;;  %v278_v36 = vsub.f32 %v277_v28, %v271_v25 }
  0xc6   : > { %v341_v52 = vmax.f32 %v340_v46, 0.0  ;;  %v357_v53 = vmax.f32 %v356_v47, 0.0 }
  0xc7   : > { %v327_v54 = vmax.f32 %v326_v48, 0.0  ;;  %v353_v55 = vmax.f32 %v352_v49, 0.0 }
  0xc9   : > { %v342_v56 = vmul.f32 %v341_v52, %v327_v54  ;;  %v358_v60 = vmul.f32 %v357_v53, %v353_v55 }
  0xca   : > { %v292_v61 = vpop.permute.xlu1 %291 }
  0xcb   : > { %v349_v59 = vsub.f32 %v348_v51, %v342_v56  ;;  %v295_v2 = vsub.f32 %v292_v61, %v294_v58  ;;  %v308_v13 = vpop.permute.xlu0 %307  ;;  %v359_v33 = vmul.f32 %v358_v60, %v342_v56 }
  0xcc   : > { %v311_v20 = vsub.f32 %v308_v13, %v310_v7 }
  0xcd   : > { %v363_v63 = vmul.f32 %v358_v60, %v349_v59  ;;  %v296_v11 = vand.u32 2147483647, %v295_v2  ;;  %v360_v17 = vsub.f32 %v358_v60, %v349_v59 }
  0xce   : > { %v312_v29 = vand.u32 2147483647, %v311_v20 }
  0xcf   : > { %611 = vrcp.f32 %v363_v63  ;;  %v297_v21 = vadd.f32 %v296_v11, %v289_v10  ;;  %v361_v26 = vmul.f32 %v360_v17, %v349_v59  ;;  %v375_v27 = vand.u32 2147483648, %v363_v63 }
  0xd0   : > { %v373_v32 = vand.u32 2147483647, %v363_v63  ;;  %vm369_vm5 = vweird.f32 %v363_v63 }
  0xd1   : > { %v305_v30 = vadd.f32 %v304_v22, %v297_v21  ;;  %v376_v35 = vor.u32 1.1754944e-38, %v375_v27  ;;  %v362_v37 = vsub.f32 %v359_v33, %v361_v26 }
  0xd2   : > { %vm374_vm7 = vcmp.eq.f32.partialorder %v373_v32, 8.507059e+37 }
  0xd3   : > { %v313_v39 = vadd.f32 %v312_v29, %v305_v30 }
  0xd5   : > { %v612_v16 = vpop.eup %611  ;;  %v380_v43 = vadd.f32 %v313_v39, %v278_v36 }
  0xd6   : > { %v365_v23 = vmul.f32 %v612_v16, %v363_v63  ;;  %vm370_vm4 = vweird.f32 %v612_v16 }
  0xd7   : > { %vm371_vm6 = vmor %vm369_vm5, %vm370_vm4 }
  0xd8   : > { %v366_v24 = vsub.f32 1.0, %v365_v23 }
  0xda   : > { %v367_v31 = vmul.f32 %v612_v16, %v366_v24 }
  0xdc   : > { %v368_v34 = vadd.f32 %v612_v16, %v367_v31 }
  0xde   : > { %v372_v38 = vsel %vm371_vm6, %v612_v16, %v368_v34 }
  0xdf   : > { %v377_v40 = vsel %vm374_vm7, %v376_v35, %v372_v38 }
  0xe0   : > { %v378_v41 = vmul.f32 %v377_v40, %v362_v37 }
  0xe2   : > { %v379_v42 = vsub.f32 0.0, %v378_v41 }
  0xe4   : > { %v381_v44 = vadd.f32 %v380_v43, %v379_v42 }
  0xe6   : > { %382 = vst [vmem:[%s242_s6] sm:$0xff] %v381_v44 }
  0xe7   : > { %730 = shalt.err (!%p727_p10)
}
  0xe8   : > { %527 = dma.vmem_to_hbm [thread:$0]  (%p875_p0), %s397_s19, 128, %s399_s9, %s384_s30  }
  0xe9 PF: > { %s410_s8 = sand.u32 1, %s765_s12   ;;  %p996_p12 = scmp.ge.s32.totalorder %s777_s15, 2 }
  0xea   : > { %s411_s25 = scalar_lea.sflag [#allocation4], %s410_s8 }
  0xeb   : > { %p541_p5 = pnand %p996_p12, %p881_p6 }
  0xed   : > { %p542_p11 = pneg %p541_p5 }
  0xef   : > { %760 = dma.done.wait (%p542_p11), %s411_s25, 128  }
  0xf0   : > { %762 = vsyncadd (%p542_p11), %s411_s25, 4294967168  ;;  %s997_s27 = sld [smem:[#allocation13_spill]]  ;;  %p19_p2 = scmp.ge.s32.totalorder %s851_s26, 4  }
  0xf1   : > { %s998_s12 = smov %s769_s13  ;;  %s999_s13 = smov %s773_s14 }
  0xf2   : > { %s1001_s15 = smov %s851_s26  ;;  %21 = sbr.rel (!%p19_p2) target bundleno = 9 (0x9), region = 94 }
  0xf6   : > { %s1000_s14 = smov %s997_s27 }
  0xf7   :  { %417 = vsyncpa [#allocation3], 1 }
  0xf8   :  { %419 = vsyncpa [#allocation3 + $0x1], 1 }
  0xf9   :  { %420 = vsyncpa [#allocation6], 1 }
  0xfa   :  { %422 = vsyncpa [#allocation6 + $0x1], 1 }
  0xfb   :  { %423 = vsyncpa [#allocation4], 1 }
  0xfc   :  { %425 = vsyncpa [#allocation4 + $0x1], 1 }

</bundles_post_ra>
